<compile_context>
chip_gen: v5e
topology: v5e:2x2
jax: 0.10.0
libtpu: 0.0.40
codegen_flags: <defaults>
</compile_context>

<pallas_src>
from collections import defaultdict

import jax
import jax.numpy as jnp
from jax import lax
from jax.experimental import pallas as pl
from jax.experimental.pallas import tpu as pltpu

_EPS = 1e-12  # F.normalize default


def _l2norm_channel_kernel(x_ref, o_ref):
    # Block: (1, C, T).  Normalize each lane (pixel) over the channel axis.
    x = x_ref[...].astype(jnp.float32)                     # one live f32 tile
    ssq = jnp.sum(x * x, axis=1, keepdims=True)            # (1, 1, T)
    inv = lax.rsqrt(jnp.maximum(ssq, _EPS * _EPS))         # EUP rsqrt (free slot)
    o_ref[...] = (x * inv).astype(o_ref.dtype)


def _vmem_budget_bytes():
    """Per-generation block budget: a small slice of physical VMEM, capped so
    the default scoped limit (16/32 MiB) is never exceeded."""
    try:
        vmem = pltpu.get_tpu_info().vmem_capacity_bytes
    except Exception:
        vmem = 64 * 1024 * 1024
    return max(2 * 1024 * 1024, min(vmem // 16, 8 * 1024 * 1024))


def _choose_lane_tile(hw, c, dtype):
    """Largest lane tile (multiple of 128, or the full extent) whose total
    footprint (double-buffered in/out at io dtype + ~2 live f32 tiles) fits
    the budget."""
    itemsize = jnp.dtype(dtype).itemsize
    pack = max(8, 32 // itemsize)             # sublane packing at io dtype
    c_pad_io = -(-c // pack) * pack
    c_pad_f32 = -(-c // 8) * 8
    bytes_per_lane = c_pad_io * itemsize * 4 + c_pad_f32 * 4 * 2
    t = _vmem_budget_bytes() // bytes_per_lane
    if t >= hw:
        return hw                              # full extent (always legal)
    t = max(128, (t // 128) * 128)             # lane-dense stores
    return min(t, hw)


def l2_normalize_dim1(x):
    """F.normalize(x, p=2, dim=1) for an array of rank >= 2 (e.g. NCHW)."""
    orig_shape = x.shape
    n, c = orig_shape[0], orig_shape[1]
    hw = 1
    for d in orig_shape[2:]:
        hw *= d
    x3 = x.reshape(n, c, hw)

    t = _choose_lane_tile(hw, c, x.dtype)
    grid = (n, pl.cdiv(hw, t))

    out3 = pl.pallas_call(
        _l2norm_channel_kernel,
        out_shape=jax.ShapeDtypeStruct((n, c, hw), x.dtype),
        grid_spec=pltpu.PrefetchScalarGridSpec(
            num_scalar_prefetch=0,
            grid=grid,
            in_specs=[pl.BlockSpec((1, c, t), lambda ni, ti: (ni, 0, ti))],
            out_specs=pl.BlockSpec((1, c, t), lambda ni, ti: (ni, 0, ti)),
        ),
        compiler_params=pltpu.CompilerParams(
            dimension_semantics=("parallel", "parallel"),
        ),
    )(x3)

    return out3.reshape(orig_shape)


_l2_normalize_jit = jax.jit(l2_normalize_dim1)


def contrastive_processor(outputs):
    """JAX/Pallas equivalent of ContrastiveProcessor.forward.

    For each dict in `outputs`, L2-normalizes output['feat'][-1] along dim=1.
    Same-shape tensors are batched into a single pallas_call.
    """
    # Group the last feature map of every output by (shape, dtype) so each
    # group is handled by one fused kernel launch.
    groups = defaultdict(list)
    for i, output in enumerate(outputs):
        f = output['feat'][-1]
        groups[(tuple(f.shape), str(jnp.dtype(f.dtype)))].append(i)

    for (_, _), idxs in groups.items():
        if len(idxs) == 1:
            i = idxs[0]
            outputs[i]['feat'][-1] = _l2_normalize_jit(outputs[i]['feat'][-1])
        else:
            stacked = jnp.concatenate(
                [outputs[i]['feat'][-1] for i in idxs], axis=0)
            normed = _l2_normalize_jit(stacked)
            per_n = outputs[idxs[0]]['feat'][-1].shape[0]
            for j, i in enumerate(idxs):
                outputs[i]['feat'][-1] = normed[j * per_n:(j + 1) * per_n]
    return outputs


if __name__ == "__main__":
    key = jax.random.PRNGKey(0)
    k1, k2, k3 = jax.random.split(key, 3)

    # Small shapes consistent with the module: batch=2, channels=4, spatial=16.
    feat1_last = jax.random.normal(k1, (2, 4, 16, 16), dtype=jnp.float32)
    feat2_last = jax.random.normal(k2, (2, 4, 16, 16), dtype=jnp.float32)
    feat1_prev = jax.random.normal(k3, (2, 4, 32, 32), dtype=jnp.float32)

    outputs = [
        {'feat': [feat1_prev, feat1_last]},   # only feat[-1] gets normalized
        {'feat': [feat2_last]},
    ]

    results = contrastive_processor(outputs)
    for r in results:
        jax.block_until_ready(r['feat'][-1])

    # Pure-JAX reference of F.normalize(x, p=2, dim=1, eps=1e-12).
    def ref_norm(x, eps=1e-12):
        xn = x.astype(jnp.float32)
        norm = jnp.sqrt(jnp.sum(xn * xn, axis=1, keepdims=True))
        return (xn / jnp.maximum(norm, eps)).astype(x.dtype)

    assert jnp.allclose(results[0]['feat'][-1], ref_norm(feat1_last),
                        atol=1e-5, rtol=1e-5)
    assert jnp.allclose(results[1]['feat'][-1], ref_norm(feat2_last),
                        atol=1e-5, rtol=1e-5)
    # Earlier feature levels must be untouched.
    assert jnp.array_equal(results[0]['feat'][0], feat1_prev)
    # Per-pixel channel vectors should have unit L2 norm.
    assert jnp.allclose(
        jnp.sqrt(jnp.sum(results[0]['feat'][-1] ** 2, axis=1)), 1.0, atol=1e-5)

    print("KERNEL_OK")
</pallas_src>

<mosaic_0001>
module attributes {stable_mosaic.version = 11 : i64} {
  func.func @_l2norm_channel_kernel(%arg0: i32, %arg1: i32, %arg2: memref<1x4x256xf32, #tpu.memory_space<vmem>>, %arg3: memref<1x4x256xf32, #tpu.memory_space<vmem>>) attributes {dimension_semantics = [#tpu.dimension_semantics<parallel>, #tpu.dimension_semantics<parallel>], iteration_bounds = array<i64: 4, 1>, scalar_prefetch = 0 : i64, scratch_operands = 0 : i64, tpu.core_type = #tpu.core_type<tc>, window_params = [{transform_indices = @transform_0, window_bounds = array<i64: 1, 4, 256>}, {transform_indices = @transform_1, window_bounds = array<i64: 1, 4, 256>}]} {
    %c0 = arith.constant 0 : index
    %c0_0 = arith.constant 0 : index
    %c0_1 = arith.constant 0 : index
    %0 = vector.load %arg2[%c0, %c0_0, %c0_1] : memref<1x4x256xf32, #tpu.memory_space<vmem>>, vector<1x4x256xf32>
    %1 = arith.mulf %0, %0 : vector<1x4x256xf32>
    %cst = arith.constant dense<0.000000e+00> : vector<1x256xf32>
    %2 = vector.multi_reduction <add>, %1, %cst [1] : vector<1x4x256xf32> to vector<1x256xf32>
    %3 = vector.shape_cast %2 : vector<1x256xf32> to vector<1x1x256xf32>
    %cst_2 = arith.constant 1.000000e-24 : f32
    %4 = vector.broadcast %cst_2 : f32 to vector<1x1x256xf32>
    %5 = arith.maximumf %3, %4 : vector<1x1x256xf32>
    %6 = math.rsqrt %5 : vector<1x1x256xf32>
    %7 = vector.broadcast %6 : vector<1x1x256xf32> to vector<1x4x256xf32>
    %8 = arith.mulf %0, %7 : vector<1x4x256xf32>
    %c0_3 = arith.constant 0 : index
    %c0_4 = arith.constant 0 : index
    %c0_5 = arith.constant 0 : index
    %9 = vector.load %arg3[%c0_3, %c0_4, %c0_5] : memref<1x4x256xf32, #tpu.memory_space<vmem>>, vector<1x4x256xf32>
    tpu.vector_store %arg3[%c0_3, %c0_4, %c0_5], %8 {strides = array<i32>} : memref<1x4x256xf32, #tpu.memory_space<vmem>>, vector<1x4x256xf32>,
    return
  }
  func.func @transform_0(%arg0: i32, %arg1: i32) -> (i32, i32, i32) {
    %c0_i32 = arith.constant 0 : i32
    %c0_i32_0 = arith.constant 0 : i32
    return %arg0, %c0_i32, %arg1 : i32, i32, i32
  }
  func.func @transform_1(%arg0: i32, %arg1: i32) -> (i32, i32, i32) {
    %c0_i32 = arith.constant 0 : i32
    %c0_i32_0 = arith.constant 0 : i32
    return %arg0, %c0_i32, %arg1 : i32, i32, i32
  }
}

</mosaic_0001>

<bundles_post_ra>
// kernel: l2_normalize_dim1.1
= control target key start
LH: loop header
LB: loop body
LE: loop exit
PB: predicated region body
PF: predicated region fallthrough
CT: control target
= control target key end

     0   :  { %s370_s6 = smov 0   ;;  %s372_s7 = smov 0   ;;  %s413_s0 = inlined_call_operand.vmem [shape: f32[4,4,256], index: 0, kind: input, shape index: {}]   ;;  %s414_s1 = inlined_call_operand.vmem [shape: f32[4,4,256], index: 1, kind: output, shape index: {}]  }
   0x1   :  { %s374_s8 = smov 0  }
   0x2 LB: > { %s23_s9 = sadd.s32 1, %s354_s7  ;;  %p299_p0 = scmp.ge.s32.totalorder %s358_s8, 1  ;;  %s358_s8 = sphi %s374_s8, %s11_s8   ;;  %s354_s7 = sphi %s372_s7, %s416_s7   ;;  %s350_s6 = sphi %s370_s6, %s415_s6  }
   0x3   : > { %p25_p1 = scmp.ge.s32.totalorder %s23_s9, 4  ;;  %p108_p2 = scmp.lt.s32.totalorder %s358_s8, 5 }
   0x5   : > { %s418_s9 = smov (%p25_p1, %s23_s9), 0  ;;  %p109_p3 = pnand %p299_p0, %p108_p2 }
   0x6   : > { %p137_p4 = scmp.lt.s32.totalorder (!%p109_p3), %s350_s6, 3 }
   0x7   : > { %112 = sbr.rel (%p109_p3) target bundleno = 66 (0x42), region = 24 }
   0xc   : > { %s420_s6 = smov (!%p137_p4, %s350_s6), 3  ;;  %vm164_vm0 = vcmask 1043456  }
   0xd   : > { %s306_s10 = sshll.u32 %s420_s6, 3 }
   0xe   : > { %s144_s13 = scalar_lea.vmem %s413_s0, %s306_s10  ;;  %s154_s16 = scalar_lea.vmem %s414_s1, %s306_s10 }
   0xf   : > { %v156_v0 = vld [vmem:[%s144_s13] sm:$0xff] }
  0x10   : > { %v157_v1 = vmul.f32 %v156_v0, %v156_v0 }
  0x12   : > { %159 = vst [vmem:[#allocation1] ss:$2 sm:$0xff] %v157_v1 }
  0x19   : > { %v160_v2 = vld.sshfl [vmem:[#allocation1] sm:$0xff pattern:$0x75316420]  ;;  %v161_v3 = vld.sshfl [vmem:[#allocation1 + $0x8] sm:$0xff pattern:$0x75316420] }
  0x1a   : > { %v165_v4 = vsel %vm164_vm0, %v160_v2, 0.0  ;;  %v172_v5 = vsel %vm164_vm0, %v161_v3, 0.0 }
  0x1b   : > { %v166_v6 = vrot.slane %v165_v4, 4  ;;  %v173_v7 = vrot.slane %v172_v5, 4 }
  0x1d   : > { %v167_v8 = vadd.f32 %v166_v6, %v165_v4  ;;  %v174_v9 = vadd.f32 %v173_v7, %v172_v5 }
  0x1f   : > { %v168_v10 = vrot.slane %v167_v8, 2  ;;  %v175_v11 = vrot.slane %v174_v9, 2 }
  0x21   : > { %v169_v12 = vadd.f32 %v168_v10, %v167_v8  ;;  %v176_v13 = vadd.f32 %v175_v11, %v174_v9 }
  0x23   : > { %v170_v14 = vrot.slane %v169_v12, 1  ;;  %v177_v15 = vrot.slane %v176_v13, 1 }
  0x25   : > { %v171_v16 = vadd.f32 %v170_v14, %v169_v12  ;;  %v178_v17 = vadd.f32 %v177_v15, %v176_v13 }
  0x27   : > { %v179_v18 = vmax.f32 %v171_v16, 1e-24  ;;  %v180_v19 = vmax.f32 %v178_v17, 1e-24 }
  0x29   : > { %332 = vrsqrt.f32 %v179_v18  ;;  %vm197_vm3 = vweird.f32 %v180_v19  ;;  %vm187_vm5 = vweird.f32 %v179_v18 }
  0x2a   : > { %334 = vrsqrt.f32 %v180_v19 }
  0x2f   : > { %v333_v20 = vpop.eup %332 }
  0x30   : > { %v335_v21 = vpop.eup %334  ;;  %v182_v22 = vmul.f32 %v333_v20, %v179_v18  ;;  %vm188_vm2 = vweird.f32 %v333_v20 }
  0x31   : > { %v192_v23 = vmul.f32 %v335_v21, %v180_v19  ;;  %vm198_vm1 = vweird.f32 %v335_v21  ;;  %vm189_vm6 = vmor %vm187_vm5, %vm188_vm2 }
  0x32   : > { %v183_v24 = vmul.f32 %v333_v20, %v182_v22  ;;  %vm199_vm4 = vmor %vm197_vm3, %vm198_vm1 }
  0x33   : > { %v193_v25 = vmul.f32 %v335_v21, %v192_v23 }
  0x34   : > { %v184_v26 = vmul.f32 0.5, %v183_v24 }
  0x35   : > { %v194_v27 = vmul.f32 0.5, %v193_v25 }
  0x36   : > { %v185_v28 = vsub.f32 1.5, %v184_v26 }
  0x37   : > { %v195_v29 = vsub.f32 1.5, %v194_v27 }
  0x38   : > { %v186_v30 = vmul.f32 %v333_v20, %v185_v28 }
  0x39   : > { %v196_v31 = vmul.f32 %v335_v21, %v195_v29 }
  0x3a   : > { %v190_v34 = vsel %vm189_vm6, %v333_v20, %v186_v30 }
  0x3b   : > { %v200_v32 = vsel %vm199_vm4, %v335_v21, %v196_v31 }
  0x3c   : > { %v203_v33 = vrot.slane %v200_v32, 4 }
  0x3e   : > { %v204_v35 = vsel %vm164_vm0, %v190_v34, %v203_v33 }
  0x3f   : > { %v206_v36 = vmul.f32 %v204_v35, %v156_v0 }
  0x41   : > { %207 = vst [vmem:[%s154_s16] sm:$0xff] %v206_v36 }
  0x42 PF: > { %s11_s8 = sadd.s32 1, %s358_s8   ;;  %s415_s6 = smov %s354_s7 }
  0x43   : > { %p8_p5 = scmp.ge.s32.totalorder %s11_s8, 6   ;;  %s416_s7 = smov %s418_s9 }
  0x45   :  { %10 = sbr.rel (!%p8_p5) target bundleno = 2 (0x2), region = 54 }

</bundles_post_ra>
